<compile_context>
chip_gen: v5e
topology: v5e:2x2
jax: 0.10.0
libtpu: 0.0.40
codegen_flags: <defaults>
</compile_context>

<pallas_src>
import functools

import jax
import jax.numpy as jnp
from jax.experimental import pallas as pl
from jax.experimental.pallas import tpu as pltpu

# Finite "-inf" so exp(m_prev - m_new) is always well defined.  Logits are
# assumed finite (a row of all -inf would be NaN with true -inf as well).
_NEG = -1e30


def _round_up(x: int, m: int) -> int:
    return ((x + m - 1) // m) * m


def _round_down(x: int, m: int) -> int:
    return (x // m) * m


def _device_kind() -> str:
    try:
        return jax.devices()[0].device_kind.lower()
    except Exception:  # pragma: no cover - CPU/interpret fallback
        return ""


def _make_ce_kernel(tile_c: int, num_classes: int, ragged_c: bool):
    """Build the CE kernel closed over static tile/class metadata."""

    def kernel(pred_ref, label_ref, nll_ref, m_sc, l_sc, p_sc):
        # pred_ref : (TILE_N, TILE_C) logits (native dtype) in VMEM
        # label_ref: (TILE_N, 1) int32 class indices in VMEM
        # nll_ref  : (TILE_N, 1) f32 per-row NLL output (resident across j)
        # m_sc/l_sc/p_sc: (TILE_N, 1) f32 running max / sum-exp / picked logit
        j = pl.program_id(1)

        @pl.when(j == 0)
        def _init():
            m_sc[...] = jnp.full_like(m_sc, _NEG)
            l_sc[...] = jnp.zeros_like(l_sc)
            p_sc[...] = jnp.zeros_like(p_sc)

        # Cast to f32 in-register (EUP exp stays f32; HBM read stays narrow).
        logits = pred_ref[...].astype(jnp.float32)            # (TILE_N, TILE_C)
        # Local column index; reused for both ragged mask and label pick.
        col = jax.lax.broadcasted_iota(jnp.int32, logits.shape, 1)

        if ragged_c:
            # Only the last class tile has columns >= C; for earlier tiles
            # (num_classes - j*tile_c) >= tile_c so the mask is a no-op.
            logits = jnp.where(col < (num_classes - j * tile_c), logits, _NEG)

        # Online logsumexp update.
        m_prev = m_sc[...]
        m_new = jnp.maximum(m_prev, jnp.max(logits, axis=-1, keepdims=True))
        alpha = jnp.exp(m_prev - m_new)
        l_sc[...] = alpha * l_sc[...] + jnp.sum(
            jnp.exp(logits - m_new), axis=-1, keepdims=True)
        m_sc[...] = m_new

        # Picked (true-class) logit: shift the label into this tile's frame
        # ((TILE_N,1) int op) instead of offsetting the full-tile iota.
        lbl_local = label_ref[...] - j * tile_c                # (TILE_N, 1) i32
        p_sc[...] += jnp.sum(
            jnp.where(col == lbl_local, logits, 0.0), axis=-1, keepdims=True)

        @pl.when(j == pl.num_programs(1) - 1)
        def _finalize():
            nll_ref[...] = m_sc[...] + jnp.log(l_sc[...]) - p_sc[...]

    return kernel


@functools.partial(jax.jit, static_argnums=(2, 3, 4))
def _ce_loss_impl(pred, label, tn, tc, core_parallel):
    n, c = pred.shape
    itemsize = jnp.dtype(pred.dtype).itemsize
    label2d = label.astype(jnp.int32).reshape(n, 1)

    grid = (pl.cdiv(n, tn), pl.cdiv(c, tc))
    ragged_c = (c % tc) != 0

    row_sem = pltpu.CORE_PARALLEL if core_parallel else pltpu.PARALLEL

    # Double-buffered logits + labels + output + running-stat scratch, plus
    # generous slack.  Explicit limit matters on v5e (16 MiB default scoped).
    vmem_need = (2 * tn * tc * itemsize       # logits double buffer
                 + 2 * tn * 4                 # labels double buffer
                 + 2 * tn * 4                 # per-row NLL output
                 + 3 * tn * 4)                # running stats scratch
    vmem_limit = int(min(vmem_need + (16 << 20), 64 << 20))

    nll = pl.pallas_call(
        _make_ce_kernel(tc, c, ragged_c),
        out_shape=jax.ShapeDtypeStruct((n, 1), jnp.float32),
        grid_spec=pltpu.PrefetchScalarGridSpec(
            num_scalar_prefetch=0,
            grid=grid,
            in_specs=[
                pl.BlockSpec((tn, tc), lambda i, j: (i, j)),   # logits tile
                pl.BlockSpec((tn, 1), lambda i, j: (i, 0)),    # labels tile
            ],
            out_specs=pl.BlockSpec((tn, 1), lambda i, j: (i, 0)),
            scratch_shapes=[
                pltpu.VMEM((tn, 1), jnp.float32),   # running max
                pltpu.VMEM((tn, 1), jnp.float32),   # running sum-exp
                pltpu.VMEM((tn, 1), jnp.float32),   # picked logit
            ],
        ),
        compiler_params=pltpu.CompilerParams(
            dimension_semantics=(row_sem, pltpu.ARBITRARY),
            vmem_limit_bytes=vmem_limit,
        ),
        cost_estimate=pl.CostEstimate(
            flops=5 * n * c,
            transcendentals=n * c,
            bytes_accessed=n * c * itemsize + 2 * n * 4,
        ),
    )(pred, label2d)

    # Tiny finalize in the wrapper: mean over the true N rows.
    loss = jnp.sum(nll[:, 0]) / jnp.float32(n)
    return loss, jnp.zeros((1,), dtype=jnp.float32)


def ce_loss(pred: jax.Array, label: jax.Array, *, tile_n=None, tile_c=None):
    """Pallas CELoss forward.  pred: (N, C) float, label: (N,) int.

    Returns (mean_loss_scalar, zeros(1)) matching the PyTorch module's
    (loss, torch.Tensor([0])) output structure.  Pass bf16 logits where
    possible -- the kernel casts to f32 internally and HBM reads stay narrow.
    """
    n, c = pred.shape
    kind = _device_kind()
    is_v7 = ("v7" in kind) or ("tpu7" in kind)
    is_v6 = "v6" in kind
    itemsize = jnp.dtype(pred.dtype).itemsize

    # --- row tile: multiple of 8 (or full N).  On v7x ensure >= 2 row tiles
    # so CORE_PARALLEL has work for both tensor cores.
    if tile_n is None:
        tn = 256
        if is_v7 and 16 <= n <= tn:
            tn = max(8, _round_up(-(-n // 2), 8))
    else:
        tn = int(tile_n)
    if tn >= n:
        tn = n                              # full-dim block (legal for any n)
    else:
        tn = max(8, _round_up(tn, 8))
        if tn >= n:
            tn = n

    # --- class tile: multiple of 128 (or full C), sized from a per-buffer
    # byte budget so the double-buffered footprint fits scoped VMEM:
    #   v6e: ~8 MiB/buffer (128 MiB VMEM), v5e/v7x/default: ~4 MiB/buffer.
    if tile_c is None:
        buf_bytes = (8 << 20) if is_v6 else (4 << 20)
        tc = max(128, _round_down(buf_bytes // max(1, tn * itemsize), 128))
    else:
        tc = int(tile_c)
    if tc >= c:
        tc = c
    else:
        tc = max(128, _round_down(tc, 128))
        if tc >= c:
            tc = c

    return _ce_loss_impl(pred, label, tn, tc, is_v7)


def _reference(pred, label):
    pred32 = pred.astype(jnp.float32)
    n = pred.shape[0]
    return jnp.mean(
        jax.nn.logsumexp(pred32, axis=-1) - pred32[jnp.arange(n), label])


if __name__ == "__main__":
    key = jax.random.PRNGKey(0)
    k1, k2, k3, k4 = jax.random.split(key, 4)

    # Case 1: tiny single-tile shapes (matches the module's simple use).
    N, C = 8, 32
    pred = jax.random.normal(k1, (N, C), dtype=jnp.float32)
    label = jax.random.randint(k2, (N,), 0, C, dtype=jnp.int32)
    loss, aux = ce_loss(pred, label)
    jax.block_until_ready((loss, aux))
    ref = _reference(pred, label)
    assert aux.shape == (1,)
    assert jnp.allclose(loss, ref, atol=1e-5, rtol=1e-5), (loss, ref)

    # Case 2: ragged N and C -> exercises tiling, in-kernel edge masking,
    # partial row blocks, and the online logsumexp.
    N2, C2 = 200, 1000
    pred2 = jax.random.normal(k3, (N2, C2), dtype=jnp.float32) * 3.0
    label2 = jax.random.randint(k4, (N2,), 0, C2, dtype=jnp.int32)
    loss2, _ = ce_loss(pred2, label2, tile_n=128, tile_c=512)
    jax.block_until_ready(loss2)
    ref2 = _reference(pred2, label2)
    assert jnp.allclose(loss2, ref2, atol=1e-4, rtol=1e-4), (loss2, ref2)

    # Case 3: bf16 logits (narrow HBM reads, f32 math in-kernel), ragged tiles.
    pred3 = pred2.astype(jnp.bfloat16)
    loss3, _ = ce_loss(pred3, label2, tile_n=64, tile_c=256)
    jax.block_until_ready(loss3)
    ref3 = _reference(pred3, label2)
    assert jnp.allclose(loss3, ref3, atol=1e-3, rtol=1e-3), (loss3, ref3)

    print("KERNEL_OK")
</pallas_src>

<mosaic_0001>
module attributes {stable_mosaic.version = 11 : i64} {
  func.func @kernel(%arg0: i32, %arg1: i32, %arg2: memref<8x32xf32, #tpu.memory_space<vmem>>, %arg3: memref<8x1xi32, #tpu.memory_space<vmem>>, %arg4: memref<8x1xf32, #tpu.memory_space<vmem>>, %arg5: memref<8x1xf32, #tpu.memory_space<vmem>>, %arg6: memref<8x1xf32, #tpu.memory_space<vmem>>, %arg7: memref<8x1xf32, #tpu.memory_space<vmem>>) attributes {dimension_semantics = [#tpu.dimension_semantics<parallel>, #tpu.dimension_semantics<arbitrary>], iteration_bounds = array<i64: 1, 1>, scalar_prefetch = 0 : i64, scratch_operands = 3 : i64, tpu.core_type = #tpu.core_type<tc>, window_params = [{transform_indices = @transform_0, window_bounds = array<i64: 8, 32>}, {transform_indices = @transform_1, window_bounds = array<i64: 8, 1>}, {transform_indices = @transform_2, window_bounds = array<i64: 8, 1>}]} {
    %c0_i32 = arith.constant 0 : i32
    %0 = arith.cmpi eq, %arg1, %c0_i32 : i32
    %1 = arith.extui %0 : i1 to i32
    %c0_i32_0 = arith.constant 0 : i32
    %2 = arith.cmpi ne, %1, %c0_i32_0 : i32
    scf.if %2 {
      %cst_21 = arith.constant -1.000000e+30 : f32
      %37 = vector.broadcast %cst_21 : f32 to vector<8x1xf32>
      %c0_22 = arith.constant 0 : index
      %c0_23 = arith.constant 0 : index
      %38 = vector.load %arg5[%c0_22, %c0_23] : memref<8x1xf32, #tpu.memory_space<vmem>>, vector<8x1xf32>
      tpu.vector_store %arg5[%c0_22, %c0_23], %37 {strides = array<i32>} : memref<8x1xf32, #tpu.memory_space<vmem>>, vector<8x1xf32>,
      %cst_24 = arith.constant 0.000000e+00 : f32
      %39 = vector.broadcast %cst_24 : f32 to vector<8x1xf32>
      %c0_25 = arith.constant 0 : index
      %c0_26 = arith.constant 0 : index
      %40 = vector.load %arg6[%c0_25, %c0_26] : memref<8x1xf32, #tpu.memory_space<vmem>>, vector<8x1xf32>
      tpu.vector_store %arg6[%c0_25, %c0_26], %39 {strides = array<i32>} : memref<8x1xf32, #tpu.memory_space<vmem>>, vector<8x1xf32>,
      %cst_27 = arith.constant 0.000000e+00 : f32
      %41 = vector.broadcast %cst_27 : f32 to vector<8x1xf32>
      %c0_28 = arith.constant 0 : index
      %c0_29 = arith.constant 0 : index
      %42 = vector.load %arg7[%c0_28, %c0_29] : memref<8x1xf32, #tpu.memory_space<vmem>>, vector<8x1xf32>
      tpu.vector_store %arg7[%c0_28, %c0_29], %41 {strides = array<i32>} : memref<8x1xf32, #tpu.memory_space<vmem>>, vector<8x1xf32>,
    } else {
    }
    %c0 = arith.constant 0 : index
    %c0_1 = arith.constant 0 : index
    %3 = vector.load %arg2[%c0, %c0_1] : memref<8x32xf32, #tpu.memory_space<vmem>>, vector<8x32xf32>
    %4 = tpu.iota {dimensions = array<i32: 1>} : vector<8x32xi32>
    %c0_2 = arith.constant 0 : index
    %c0_3 = arith.constant 0 : index
    %5 = vector.load %arg5[%c0_2, %c0_3] : memref<8x1xf32, #tpu.memory_space<vmem>>, vector<8x1xf32>
    %cst = arith.constant dense<0xFF800000> : vector<8xf32>
    %6 = vector.multi_reduction <maximumf>, %3, %cst [1] : vector<8x32xf32> to vector<8xf32>
    %7 = vector.shape_cast %6 : vector<8xf32> to vector<8x1xf32>
    %8 = arith.maximumf %5, %7 : vector<8x1xf32>
    %9 = arith.subf %5, %8 : vector<8x1xf32>
    %10 = math.exp %9 : vector<8x1xf32>
    %c0_4 = arith.constant 0 : index
    %c0_5 = arith.constant 0 : index
    %11 = vector.load %arg6[%c0_4, %c0_5] : memref<8x1xf32, #tpu.memory_space<vmem>>, vector<8x1xf32>
    %12 = arith.mulf %10, %11 : vector<8x1xf32>
    %13 = vector.broadcast %8 : vector<8x1xf32> to vector<8x32xf32>
    %14 = arith.subf %3, %13 : vector<8x32xf32>
    %15 = math.exp %14 : vector<8x32xf32>
    %cst_6 = arith.constant dense<0.000000e+00> : vector<8xf32>
    %16 = vector.multi_reduction <add>, %15, %cst_6 [1] : vector<8x32xf32> to vector<8xf32>
    %17 = vector.shape_cast %16 : vector<8xf32> to vector<8x1xf32>
    %18 = arith.addf %12, %17 : vector<8x1xf32>
    %c0_7 = arith.constant 0 : index
    %c0_8 = arith.constant 0 : index
    %19 = vector.load %arg6[%c0_7, %c0_8] : memref<8x1xf32, #tpu.memory_space<vmem>>, vector<8x1xf32>
    tpu.vector_store %arg6[%c0_7, %c0_8], %18 {strides = array<i32>} : memref<8x1xf32, #tpu.memory_space<vmem>>, vector<8x1xf32>,
    %c0_9 = arith.constant 0 : index
    %c0_10 = arith.constant 0 : index
    %20 = vector.load %arg5[%c0_9, %c0_10] : memref<8x1xf32, #tpu.memory_space<vmem>>, vector<8x1xf32>
    tpu.vector_store %arg5[%c0_9, %c0_10], %8 {strides = array<i32>} : memref<8x1xf32, #tpu.memory_space<vmem>>, vector<8x1xf32>,
    %c0_11 = arith.constant 0 : index
    %c0_12 = arith.constant 0 : index
    %21 = vector.load %arg3[%c0_11, %c0_12] : memref<8x1xi32, #tpu.memory_space<vmem>>, vector<8x1xi32>
    %c32_i32 = arith.constant 32 : i32
    %22 = arith.muli %arg1, %c32_i32 : i32
    %23 = vector.broadcast %22 : i32 to vector<8x1xi32>
    %24 = arith.subi %21, %23 : vector<8x1xi32>
    %c0_13 = arith.constant 0 : index
    %c0_14 = arith.constant 0 : index
    %25 = vector.load %arg7[%c0_13, %c0_14] : memref<8x1xf32, #tpu.memory_space<vmem>>, vector<8x1xf32>
    %26 = vector.broadcast %24 : vector<8x1xi32> to vector<8x32xi32>
    %27 = arith.cmpi eq, %4, %26 : vector<8x32xi32>
    %cst_15 = arith.constant 0.000000e+00 : f32
    %28 = vector.broadcast %cst_15 : f32 to vector<8x32xf32>
    %29 = arith.select %27, %3, %28 : vector<8x32xi1>, vector<8x32xf32>
    %cst_16 = arith.constant dense<0.000000e+00> : vector<8xf32>
    %30 = vector.multi_reduction <add>, %29, %cst_16 [1] : vector<8x32xf32> to vector<8xf32>
    %31 = vector.shape_cast %30 : vector<8xf32> to vector<8x1xf32>
    %32 = arith.addf %25, %31 : vector<8x1xf32>
    %c0_17 = arith.constant 0 : index
    %c0_18 = arith.constant 0 : index
    %33 = vector.load %arg7[%c0_17, %c0_18] : memref<8x1xf32, #tpu.memory_space<vmem>>, vector<8x1xf32>
    tpu.vector_store %arg7[%c0_17, %c0_18], %32 {strides = array<i32>} : memref<8x1xf32, #tpu.memory_space<vmem>>, vector<8x1xf32>,
    %c0_i32_19 = arith.constant 0 : i32
    %34 = arith.cmpi eq, %arg1, %c0_i32_19 : i32
    %35 = arith.extui %34 : i1 to i32
    %c0_i32_20 = arith.constant 0 : i32
    %36 = arith.cmpi ne, %35, %c0_i32_20 : i32
    scf.if %36 {
      %c0_21 = arith.constant 0 : index
      %c0_22 = arith.constant 0 : index
      %37 = vector.load %arg5[%c0_21, %c0_22] : memref<8x1xf32, #tpu.memory_space<vmem>>, vector<8x1xf32>
      %c0_23 = arith.constant 0 : index
      %c0_24 = arith.constant 0 : index
      %38 = vector.load %arg6[%c0_23, %c0_24] : memref<8x1xf32, #tpu.memory_space<vmem>>, vector<8x1xf32>
      %39 = math.log %38 : vector<8x1xf32>
      %40 = arith.addf %37, %39 : vector<8x1xf32>
      %c0_25 = arith.constant 0 : index
      %c0_26 = arith.constant 0 : index
      %41 = vector.load %arg7[%c0_25, %c0_26] : memref<8x1xf32, #tpu.memory_space<vmem>>, vector<8x1xf32>
      %42 = arith.subf %40, %41 : vector<8x1xf32>
      %c0_27 = arith.constant 0 : index
      %c0_28 = arith.constant 0 : index
      %43 = vector.load %arg4[%c0_27, %c0_28] : memref<8x1xf32, #tpu.memory_space<vmem>>, vector<8x1xf32>
      tpu.vector_store %arg4[%c0_27, %c0_28], %42 {strides = array<i32>} : memref<8x1xf32, #tpu.memory_space<vmem>>, vector<8x1xf32>,
    } else {
    }
    return
  }
  func.func @transform_0(%arg0: i32, %arg1: i32) -> (i32, i32) {
    %c0_i32 = arith.constant 0 : i32
    return %arg0, %arg1 : i32, i32
  }
  func.func @transform_1(%arg0: i32, %arg1: i32) -> (i32, i32) {
    %c0_i32 = arith.constant 0 : i32
    %c0_i32_0 = arith.constant 0 : i32
    return %arg0, %c0_i32 : i32, i32
  }
  func.func @transform_2(%arg0: i32, %arg1: i32) -> (i32, i32) {
    %c0_i32 = arith.constant 0 : i32
    %c0_i32_0 = arith.constant 0 : i32
    return %arg0, %c0_i32 : i32, i32
  }
}

</mosaic_0001>

<bundles_post_ra>
// kernel: _ce_loss_impl.1
= control target key start
LH: loop header
LB: loop body
LE: loop exit
PB: predicated region body
PF: predicated region fallthrough
CT: control target
= control target key end

     0   :  { %vm23_vm0 = vcmask 261120   ;;  %vm15_vm1 = vcmask 7168   ;;  %v89_v1 = vmov -1e+30   ;;  %v90_v3 = vmov 0   ;;  %s126_s0 = inlined_call_operand.vmem [shape: f32[8,32], index: 0, kind: input, shape index: {}]   ;;  %s127_s1 = inlined_call_operand.vmem [shape: s32[8,1], index: 1, kind: input, shape index: {}]   ;;  %s128_s2 = inlined_call_operand.vmem [shape: f32[8,1], index: 2, kind: output, shape index: {}]  }
   0x1   :  { %v19_v0 = vld [vmem:[%s126_s0] sm:$0xff]  ;;  %16 = vst.msk [vmem:[#allocation2] sm:$0xff] %vm15_vm1, %v89_v1  ;;  %81 = vset.pattern.permute.xlu0 %v90_v3  ;;  %82 = vset.pattern.permute.xlu1 %v90_v3  ;;  %v91_v4 = vmov 0.0   ;;  %v20_v10 = vlaneseq }
   0x2   :  { %v24_v2 = vsel %vm23_vm0, %v19_v0, -inf  ;;  %17 = vst.msk [vmem:[#allocation3] sm:$0xff] %vm15_vm1, %v91_v4  ;;  %v48_v5 = vld [vmem:[%s127_s1] sm:$0xff] }
   0x3   :  { %25 = vmax.xlane.f32.xlu0 %v24_v2  ;;  %18 = vst.msk [vmem:[#allocation4] sm:$0xff] %vm15_vm1, %v91_v4  ;;  %54 = vperm.xlu1 %82, %v48_v5   ;;  %v21_v12 = vand.u32 127, %v20_v10 }
   0x8   :  { %v22_v6 = vld [vmem:[#allocation2] sm:$0xff] }
   0x9   :  { %v31_v25 = vld [vmem:[#allocation3] sm:$0xff] }
   0xa   :  { %v52_v20 = vld [vmem:[#allocation4] sm:$0xff] }
  0x75   :  { %v55_v11 = vpop.permute.xlu1 %54 }
  0x76   :  { %v26_v7 = vpop.xlane.xlu0 %25  ;;  %vm56_vm2 = vcmp.eq.s32.totalorder %v21_v12, %v55_v11 }
  0x77   :  { %v27_v8 = vmax.f32 %v22_v6, %v26_v7  ;;  %v57_v13 = vsel %vm56_vm2, %v19_v0, 0.0 }
  0x78   :  { %v58_v14 = vsel %vm23_vm0, %v57_v13, 0.0 }
  0x79   :  { %v28_v9 = vsub.f32 %v22_v6, %v27_v8  ;;  %47 = vst.msk [vmem:[#allocation2] sm:$0xff] %vm15_vm1, %v27_v8  ;;  %35 = vperm.xlu0 %81, %v27_v8   ;;  %59 = vadd.xlane.f32.xlu2 %v58_v14 }
  0x7b   :  { %v29_v23 = vmul.f32 1.442695, %v28_v9 }
  0x80   :  { %v66_v32 = vld [vmem:[#allocation2] sm:$0xff] }
  0xeb   :  { %v36_v15 = vpop.permute.xlu0 %35 }
  0xec   :  { %v38_v16 = vsub.f32 %v19_v0, %v36_v15  ;;  %v60_v21 = vpop.xlane.xlu2 %59 }
  0xed   :  { %v61_v22 = vadd.f32 %v60_v21, %v52_v20 }
  0xee   :  { %v39_v17 = vmul.f32 1.442695, %v38_v16 }
  0xef   :  { %62 = vst.msk [vmem:[#allocation4] sm:$0xff] %vm15_vm1, %v61_v22 }
  0xf0   :  { %83 = vpow2.f32 %v39_v17 }
  0xf1   :  { %85 = vpow2.f32 %v29_v23 }
  0xf6   :  { %v84_v18 = vpop.eup %83  ;;  %v71_v33 = vld [vmem:[#allocation4] sm:$0xff] }
  0xf7   :  { %v41_v19 = vsel %vm23_vm0, %v84_v18, 0.0  ;;  %v86_v24 = vpop.eup %85 }
  0xf8   :  { %42 = vadd.xlane.f32.xlu1 %v41_v19  ;;  %v32_v26 = vmul.f32 %v86_v24, %v31_v25 }
 0x16b   :  { %v43_v27 = vpop.xlane.xlu1 %42 }
 0x16c   :  { %v44_v28 = vadd.f32 %v43_v27, %v32_v26 }
 0x16e   :  { %46 = vst.msk [vmem:[#allocation3] sm:$0xff] %vm15_vm1, %v44_v28 }
 0x175   :  { %v67_v29 = vld [vmem:[#allocation3] sm:$0xff] }
 0x176   :  { %87 = vlog2.f32 %v67_v29 }
 0x17c   :  { %v88_v30 = vpop.eup %87 }
 0x17d   :  { %v69_v31 = vmul.f32 0.6931472, %v88_v30 }
 0x17f   :  { %v70_v34 = vadd.f32 %v69_v31, %v66_v32 }
 0x181   :  { %v72_v35 = vsub.f32 %v70_v34, %v71_v33 }
 0x183   :  { %73 = vst.msk [vmem:[%s128_s2] sm:$0xff] %vm15_vm1, %v72_v35 }

</bundles_post_ra>
